<compile_context>
chip_gen: v7x
topology: tpu7x:2x2x1
jax: 0.10.0
libtpu: 0.0.40
codegen_flags: <defaults>
</compile_context>

<pallas_src>
from functools import partial

import jax
import jax.numpy as jnp
from jax.experimental import pallas as pl
from jax.experimental.pallas import tpu as pltpu  # noqa: F401  (TPU backend)

LANES = 128  # lane-pad the logits row so the final store is unmasked


# ----------------------------- fused Pallas kernel -------------------------
def _fused_cnn_kernel(x_ref, w1_ref, b1_ref, w2_ref, b2_ref, w3_ref, b3_ref,
                      w4_ref, b4_ref, wfc_ref, bfc_ref, o_ref):
    """Entire forward pass on whole-array VMEM blocks (no grid)."""

    def conv_block(h, w_ref, b_ref):
        # h:     (rows, feat) channels-last activations, feat = KW*Cin of this conv
        # w_ref: (2*feat, Cout); rows [0:feat] are kh=0 taps, [feat:2*feat] kh=1
        n_out = h.shape[0] - 1                 # KH = 2, stride 1, no padding
        feat = h.shape[1]
        top = jnp.dot(h[0:n_out, :], w_ref[0:feat, :],
                      preferred_element_type=jnp.float32)
        bot = jnp.dot(h[1:n_out + 1, :], w_ref[feat:2 * feat, :],
                      preferred_element_type=jnp.float32)
        return jnp.maximum(top + bot + b_ref[...], 0.0)

    h = x_ref[...]                             # (7, W*Cin)  channels-last rows
    h = conv_block(h, w1_ref, b1_ref)          # (6, 2C)
    h = conv_block(h, w2_ref, b2_ref)          # (5, 3C)
    h = conv_block(h, w3_ref, b3_ref)          # (4, 4C)
    h = conv_block(h, w4_ref, b4_ref)          # (3, 5C)

    # FC: logits[k] = b[k] + sum_{r,c} h[r, c] * Wfc[r*5C + c, k]
    rows, c5 = h.shape
    logits = bfc_ref[...]                      # (1, LANES)
    for r in range(rows):                      # static unroll (rows == 3)
        logits = logits + jnp.dot(h[r:r + 1, :],
                                  wfc_ref[r * c5:(r + 1) * c5, :],
                                  preferred_element_type=jnp.float32)
    o_ref[...] = logits.astype(o_ref.dtype)


def fused_cnn_call(x2d, w1, b1, w2, b2, w3, b3, w4, b4, wfc, bfc):
    operands = (x2d, w1, b1, w2, b2, w3, b3, w4, b4, wfc, bfc)

    # tiny advisory cost estimate so XLA treats the custom call as cheap
    flops = 0
    r = x2d.shape[0]
    for w in (w1, w2, w3, w4):
        r -= 1
        flops += 2 * r * w.shape[0] * w.shape[1]
    flops += 2 * wfc.shape[0] * wfc.shape[1]
    bytes_accessed = 4 * (sum(int(op.size) for op in operands) + LANES)

    return pl.pallas_call(
        _fused_cnn_kernel,
        out_shape=jax.ShapeDtypeStruct((1, LANES), jnp.float32),
        in_specs=[pl.BlockSpec(op.shape, lambda: (0, 0)) for op in operands],
        out_specs=pl.BlockSpec((1, LANES), lambda: (0, 0)),
        cost_estimate=pl.CostEstimate(flops=int(flops), transcendentals=0,
                                      bytes_accessed=int(bytes_accessed)),
    )(*operands)


# --------------------------- params: init & one-time prep ------------------
def init_params(key, num_channels, num_classes):
    """PyTorch-layout parameters (Conv2d OIHW, Linear (out,in))."""
    c = num_channels
    conv_shapes = [
        (2 * c, c, 2, 4),      # block1
        (3 * c, 2 * c, 2, 1),  # block2
        (4 * c, 3 * c, 2, 1),  # block3
        (5 * c, 4 * c, 2, 1),  # block4
    ]
    params = {}
    keys = jax.random.split(key, 10)
    for idx, shp in enumerate(conv_shapes):
        fan_in = shp[1] * shp[2] * shp[3]
        bound = 1.0 / (fan_in ** 0.5)
        params[f"conv{idx + 1}_w"] = jax.random.uniform(
            keys[2 * idx], shp, jnp.float32, -bound, bound)
        params[f"conv{idx + 1}_b"] = jax.random.uniform(
            keys[2 * idx + 1], (shp[0],), jnp.float32, -bound, bound)
    fc_in = 15 * c
    bound = 1.0 / (fc_in ** 0.5)
    params["fc_w"] = jax.random.uniform(
        keys[8], (num_classes, fc_in), jnp.float32, -bound, bound)
    params["fc_b"] = jax.random.uniform(
        keys[9], (num_classes,), jnp.float32, -bound, bound)
    return params


def prepare_params(params, num_channels, num_classes):
    """One-time weight permutation/transposition; removes all hot-path transposes.

    Conv weight columns are reordered from PyTorch's (ci, kh, kw) to (kh, kw, ci)
    so that the in-kernel im2col is two height-shifted slices of channels-last rows.
    The FC weight is reordered from NCHW-flatten (c*3 + h) to row-major (h*5C + c)
    and lane-padded to 128 output columns.
    """
    c = num_channels
    prepped = {}
    for i in range(1, 5):
        w = params[f"conv{i}_w"]                                   # (Cout,Cin,KH,KW)
        cout = w.shape[0]
        prepped[f"w{i}"] = w.transpose(0, 2, 3, 1).reshape(cout, -1).T  # (KH*KW*Cin, Cout)
        prepped[f"b{i}"] = params[f"conv{i}_b"].reshape(1, cout)
    k = num_classes
    fcw = params["fc_w"].reshape(k, 5 * c, 3).transpose(0, 2, 1).reshape(k, 15 * c).T
    prepped["wfc"] = jnp.pad(fcw, ((0, 0), (0, LANES - k)))        # (15C, 128)
    prepped["bfc"] = jnp.pad(params["fc_b"].reshape(1, k), ((0, 0), (0, LANES - k)))
    return prepped


# --------------------------------- forward ---------------------------------
@partial(jax.jit, static_argnames=("num_classes",))
def cnn_forward(prepped, x, *, num_classes):
    n, c, h, w = x.shape
    # PyTorch's out.view(-1, out.numel()) before fc1 implies batch size 1.
    assert n == 1, "CNN.forward (view(-1, numel)) requires batch size 1"
    # single tiny relayout outside the kernel: (1,C,H,W) -> channels-last rows (H, W*C)
    x2d = x[0].transpose(1, 2, 0).reshape(h, w * c)
    logits_padded = fused_cnn_call(
        x2d,
        prepped["w1"], prepped["b1"], prepped["w2"], prepped["b2"],
        prepped["w3"], prepped["b3"], prepped["w4"], prepped["b4"],
        prepped["wfc"], prepped["bfc"])
    return logits_padded[:, :num_classes]


# ----------------------- pure-JAX reference (for checking) -----------------
def _reference_forward(params, x):
    def conv2d(x, w, b):
        n, cin, hh, ww = x.shape
        cout, _, kh, kw = w.shape
        ho, wo = hh - kh + 1, ww - kw + 1
        patches = jnp.stack(
            [x[:, :, i:i + ho, j:j + wo] for i in range(kh) for j in range(kw)],
            axis=2)                                    # (N, Cin, KH*KW, Ho, Wo)
        patches = patches.reshape(n, cin * kh * kw, ho, wo)
        out = jnp.einsum("nkhw,ck->nchw", patches, w.reshape(cout, cin * kh * kw))
        return out + b.reshape(1, cout, 1, 1)

    out = jax.nn.relu(conv2d(x, params["conv1_w"], params["conv1_b"]))
    out = jax.nn.relu(conv2d(out, params["conv2_w"], params["conv2_b"]))
    out = jax.nn.relu(conv2d(out, params["conv3_w"], params["conv3_b"]))
    out = jax.nn.relu(conv2d(out, params["conv4_w"], params["conv4_b"]))
    out = out.reshape(1, -1)                           # NCHW flatten: (c*3 + h)
    return out @ params["fc_w"].T + params["fc_b"].reshape(1, -1)


if __name__ == "__main__":
    num_channels = 4
    num_classes = 10

    key = jax.random.PRNGKey(0)
    k_param, k_x = jax.random.split(key)

    params = init_params(k_param, num_channels, num_classes)
    prepped = prepare_params(params, num_channels, num_classes)

    # Input (NCHW). H=7, W=4 -> after the 4 conv blocks the map is (1, 5C, 3, 1),
    # numel = 15C, matching nn.Linear(num_channels*15, num_classes).
    x = jax.random.normal(k_x, (1, num_channels, 7, 4), dtype=jnp.float32)

    out = cnn_forward(prepped, x, num_classes=num_classes)
    out = jax.block_until_ready(out)
    assert out.shape == (1, num_classes), out.shape

    ref = jax.block_until_ready(_reference_forward(params, x))
    err = float(jnp.max(jnp.abs(out - ref)))
    # loose tolerance: covers MXU default-precision f32 matmul slop, catches any
    # weight-permutation / im2col-ordering bug (which would be O(logit scale)).
    assert err < 2e-2, f"mismatch vs reference: max abs err {err}"

    print("KERNEL_OK")
</pallas_src>

<mosaic_0001>
module attributes {stable_mosaic.version = 11 : i64} {
  func.func @_fused_cnn_kernel(%arg0: memref<7x16xf32, #tpu.memory_space<vmem>>, %arg1: memref<32x8xf32, #tpu.memory_space<vmem>>, %arg2: memref<1x8xf32, #tpu.memory_space<vmem>>, %arg3: memref<16x12xf32, #tpu.memory_space<vmem>>, %arg4: memref<1x12xf32, #tpu.memory_space<vmem>>, %arg5: memref<24x16xf32, #tpu.memory_space<vmem>>, %arg6: memref<1x16xf32, #tpu.memory_space<vmem>>, %arg7: memref<32x20xf32, #tpu.memory_space<vmem>>, %arg8: memref<1x20xf32, #tpu.memory_space<vmem>>, %arg9: memref<60x128xf32, #tpu.memory_space<vmem>>, %arg10: memref<1x128xf32, #tpu.memory_space<vmem>>, %arg11: memref<1x128xf32, #tpu.memory_space<vmem>>) attributes {dimension_semantics = [], scalar_prefetch = 0 : i64, scratch_operands = 0 : i64, tpu.core_type = #tpu.core_type<tc>} {
    %c0 = arith.constant 0 : index
    %c0_0 = arith.constant 0 : index
    %0 = vector.load %arg0[%c0, %c0_0] : memref<7x16xf32, #tpu.memory_space<vmem>>, vector<7x16xf32>
    %1 = vector.extract_strided_slice %0 {offsets = [0, 0], sizes = [6, 16], strides = [1, 1]} : vector<7x16xf32> to vector<6x16xf32>
    %c0_1 = arith.constant 0 : index
    %c0_2 = arith.constant 0 : index
    %2 = vector.load %arg1[%c0_1, %c0_2] : memref<32x8xf32, #tpu.memory_space<vmem>>, vector<16x8xf32>
    %cst = arith.constant dense<0.000000e+00> : vector<6x8xf32>
    %3 = tpu.matmul %1, %2, %cst {dimension_numbers = #tpu.dot_dimension_numbers<[1], [0], [0], [1], [0, 0, 1, 1], [], []>} : vector<6x16xf32>, vector<16x8xf32>, vector<6x8xf32> -> vector<6x8xf32>
    %4 = vector.extract_strided_slice %0 {offsets = [1, 0], sizes = [6, 16], strides = [1, 1]} : vector<7x16xf32> to vector<6x16xf32>
    %c16 = arith.constant 16 : index
    %c0_3 = arith.constant 0 : index
    %5 = vector.load %arg1[%c16, %c0_3] : memref<32x8xf32, #tpu.memory_space<vmem>>, vector<16x8xf32>
    %cst_4 = arith.constant dense<0.000000e+00> : vector<6x8xf32>
    %6 = tpu.matmul %4, %5, %cst_4 {dimension_numbers = #tpu.dot_dimension_numbers<[1], [0], [0], [1], [0, 0, 1, 1], [], []>} : vector<6x16xf32>, vector<16x8xf32>, vector<6x8xf32> -> vector<6x8xf32>
    %7 = arith.addf %3, %6 : vector<6x8xf32>
    %c0_5 = arith.constant 0 : index
    %c0_6 = arith.constant 0 : index
    %8 = vector.load %arg2[%c0_5, %c0_6] : memref<1x8xf32, #tpu.memory_space<vmem>>, vector<1x8xf32>
    %9 = vector.broadcast %8 : vector<1x8xf32> to vector<6x8xf32>
    %10 = arith.addf %7, %9 : vector<6x8xf32>
    %cst_7 = arith.constant 0.000000e+00 : f32
    %11 = vector.broadcast %cst_7 : f32 to vector<6x8xf32>
    %12 = arith.maximumf %10, %11 : vector<6x8xf32>
    %13 = vector.extract_strided_slice %12 {offsets = [0, 0], sizes = [5, 8], strides = [1, 1]} : vector<6x8xf32> to vector<5x8xf32>
    %c0_8 = arith.constant 0 : index
    %c0_9 = arith.constant 0 : index
    %14 = vector.load %arg3[%c0_8, %c0_9] : memref<16x12xf32, #tpu.memory_space<vmem>>, vector<8x12xf32>
    %cst_10 = arith.constant dense<0.000000e+00> : vector<5x12xf32>
    %15 = tpu.matmul %13, %14, %cst_10 {dimension_numbers = #tpu.dot_dimension_numbers<[1], [0], [0], [1], [0, 0, 1, 1], [], []>} : vector<5x8xf32>, vector<8x12xf32>, vector<5x12xf32> -> vector<5x12xf32>
    %16 = vector.extract_strided_slice %12 {offsets = [1, 0], sizes = [5, 8], strides = [1, 1]} : vector<6x8xf32> to vector<5x8xf32>
    %c8 = arith.constant 8 : index
    %c0_11 = arith.constant 0 : index
    %17 = vector.load %arg3[%c8, %c0_11] : memref<16x12xf32, #tpu.memory_space<vmem>>, vector<8x12xf32>
    %cst_12 = arith.constant dense<0.000000e+00> : vector<5x12xf32>
    %18 = tpu.matmul %16, %17, %cst_12 {dimension_numbers = #tpu.dot_dimension_numbers<[1], [0], [0], [1], [0, 0, 1, 1], [], []>} : vector<5x8xf32>, vector<8x12xf32>, vector<5x12xf32> -> vector<5x12xf32>
    %19 = arith.addf %15, %18 : vector<5x12xf32>
    %c0_13 = arith.constant 0 : index
    %c0_14 = arith.constant 0 : index
    %20 = vector.load %arg4[%c0_13, %c0_14] : memref<1x12xf32, #tpu.memory_space<vmem>>, vector<1x12xf32>
    %21 = vector.broadcast %20 : vector<1x12xf32> to vector<5x12xf32>
    %22 = arith.addf %19, %21 : vector<5x12xf32>
    %cst_15 = arith.constant 0.000000e+00 : f32
    %23 = vector.broadcast %cst_15 : f32 to vector<5x12xf32>
    %24 = arith.maximumf %22, %23 : vector<5x12xf32>
    %25 = vector.extract_strided_slice %24 {offsets = [0, 0], sizes = [4, 12], strides = [1, 1]} : vector<5x12xf32> to vector<4x12xf32>
    %c0_16 = arith.constant 0 : index
    %c0_17 = arith.constant 0 : index
    %26 = vector.load %arg5[%c0_16, %c0_17] : memref<24x16xf32, #tpu.memory_space<vmem>>, vector<12x16xf32>
    %cst_18 = arith.constant dense<0.000000e+00> : vector<4x16xf32>
    %27 = tpu.matmul %25, %26, %cst_18 {dimension_numbers = #tpu.dot_dimension_numbers<[1], [0], [0], [1], [0, 0, 1, 1], [], []>} : vector<4x12xf32>, vector<12x16xf32>, vector<4x16xf32> -> vector<4x16xf32>
    %28 = vector.extract_strided_slice %24 {offsets = [1, 0], sizes = [4, 12], strides = [1, 1]} : vector<5x12xf32> to vector<4x12xf32>
    %c12 = arith.constant 12 : index
    %c0_19 = arith.constant 0 : index
    %29 = vector.load %arg5[%c12, %c0_19] : memref<24x16xf32, #tpu.memory_space<vmem>>, vector<12x16xf32>
    %cst_20 = arith.constant dense<0.000000e+00> : vector<4x16xf32>
    %30 = tpu.matmul %28, %29, %cst_20 {dimension_numbers = #tpu.dot_dimension_numbers<[1], [0], [0], [1], [0, 0, 1, 1], [], []>} : vector<4x12xf32>, vector<12x16xf32>, vector<4x16xf32> -> vector<4x16xf32>
    %31 = arith.addf %27, %30 : vector<4x16xf32>
    %c0_21 = arith.constant 0 : index
    %c0_22 = arith.constant 0 : index
    %32 = vector.load %arg6[%c0_21, %c0_22] : memref<1x16xf32, #tpu.memory_space<vmem>>, vector<1x16xf32>
    %33 = vector.broadcast %32 : vector<1x16xf32> to vector<4x16xf32>
    %34 = arith.addf %31, %33 : vector<4x16xf32>
    %cst_23 = arith.constant 0.000000e+00 : f32
    %35 = vector.broadcast %cst_23 : f32 to vector<4x16xf32>
    %36 = arith.maximumf %34, %35 : vector<4x16xf32>
    %37 = vector.extract_strided_slice %36 {offsets = [0, 0], sizes = [3, 16], strides = [1, 1]} : vector<4x16xf32> to vector<3x16xf32>
    %c0_24 = arith.constant 0 : index
    %c0_25 = arith.constant 0 : index
    %38 = vector.load %arg7[%c0_24, %c0_25] : memref<32x20xf32, #tpu.memory_space<vmem>>, vector<16x20xf32>
    %cst_26 = arith.constant dense<0.000000e+00> : vector<3x20xf32>
    %39 = tpu.matmul %37, %38, %cst_26 {dimension_numbers = #tpu.dot_dimension_numbers<[1], [0], [0], [1], [0, 0, 1, 1], [], []>} : vector<3x16xf32>, vector<16x20xf32>, vector<3x20xf32> -> vector<3x20xf32>
    %40 = vector.extract_strided_slice %36 {offsets = [1, 0], sizes = [3, 16], strides = [1, 1]} : vector<4x16xf32> to vector<3x16xf32>
    %c16_27 = arith.constant 16 : index
    %c0_28 = arith.constant 0 : index
    %41 = vector.load %arg7[%c16_27, %c0_28] : memref<32x20xf32, #tpu.memory_space<vmem>>, vector<16x20xf32>
    %cst_29 = arith.constant dense<0.000000e+00> : vector<3x20xf32>
    %42 = tpu.matmul %40, %41, %cst_29 {dimension_numbers = #tpu.dot_dimension_numbers<[1], [0], [0], [1], [0, 0, 1, 1], [], []>} : vector<3x16xf32>, vector<16x20xf32>, vector<3x20xf32> -> vector<3x20xf32>
    %43 = arith.addf %39, %42 : vector<3x20xf32>
    %c0_30 = arith.constant 0 : index
    %c0_31 = arith.constant 0 : index
    %44 = vector.load %arg8[%c0_30, %c0_31] : memref<1x20xf32, #tpu.memory_space<vmem>>, vector<1x20xf32>
    %45 = vector.broadcast %44 : vector<1x20xf32> to vector<3x20xf32>
    %46 = arith.addf %43, %45 : vector<3x20xf32>
    %cst_32 = arith.constant 0.000000e+00 : f32
    %47 = vector.broadcast %cst_32 : f32 to vector<3x20xf32>
    %48 = arith.maximumf %46, %47 : vector<3x20xf32>
    %c0_33 = arith.constant 0 : index
    %c0_34 = arith.constant 0 : index
    %49 = vector.load %arg10[%c0_33, %c0_34] : memref<1x128xf32, #tpu.memory_space<vmem>>, vector<1x128xf32>
    %50 = vector.extract_strided_slice %48 {offsets = [0, 0], sizes = [1, 20], strides = [1, 1]} : vector<3x20xf32> to vector<1x20xf32>
    %c0_35 = arith.constant 0 : index
    %c0_36 = arith.constant 0 : index
    %51 = vector.load %arg9[%c0_35, %c0_36] : memref<60x128xf32, #tpu.memory_space<vmem>>, vector<20x128xf32>
    %cst_37 = arith.constant dense<0.000000e+00> : vector<1x128xf32>
    %52 = tpu.matmul %50, %51, %cst_37 {dimension_numbers = #tpu.dot_dimension_numbers<[1], [0], [0], [1], [0, 0, 1, 1], [], []>} : vector<1x20xf32>, vector<20x128xf32>, vector<1x128xf32> -> vector<1x128xf32>
    %53 = arith.addf %49, %52 : vector<1x128xf32>
    %54 = vector.extract_strided_slice %48 {offsets = [1, 0], sizes = [1, 20], strides = [1, 1]} : vector<3x20xf32> to vector<1x20xf32>
    %c20 = arith.constant 20 : index
    %c0_38 = arith.constant 0 : index
    %55 = vector.load %arg9[%c20, %c0_38] : memref<60x128xf32, #tpu.memory_space<vmem>>, vector<20x128xf32>
    %cst_39 = arith.constant dense<0.000000e+00> : vector<1x128xf32>
    %56 = tpu.matmul %54, %55, %cst_39 {dimension_numbers = #tpu.dot_dimension_numbers<[1], [0], [0], [1], [0, 0, 1, 1], [], []>} : vector<1x20xf32>, vector<20x128xf32>, vector<1x128xf32> -> vector<1x128xf32>
    %57 = arith.addf %53, %56 : vector<1x128xf32>
    %58 = vector.extract_strided_slice %48 {offsets = [2, 0], sizes = [1, 20], strides = [1, 1]} : vector<3x20xf32> to vector<1x20xf32>
    %c40 = arith.constant 40 : index
    %c0_40 = arith.constant 0 : index
    %59 = vector.load %arg9[%c40, %c0_40] : memref<60x128xf32, #tpu.memory_space<vmem>>, vector<20x128xf32>
    %cst_41 = arith.constant dense<0.000000e+00> : vector<1x128xf32>
    %60 = tpu.matmul %58, %59, %cst_41 {dimension_numbers = #tpu.dot_dimension_numbers<[1], [0], [0], [1], [0, 0, 1, 1], [], []>} : vector<1x20xf32>, vector<20x128xf32>, vector<1x128xf32> -> vector<1x128xf32>
    %61 = arith.addf %57, %60 : vector<1x128xf32>
    %c0_42 = arith.constant 0 : index
    %c0_43 = arith.constant 0 : index
    %62 = vector.load %arg11[%c0_42, %c0_43] : memref<1x128xf32, #tpu.memory_space<vmem>>, vector<1x128xf32>
    tpu.vector_store %arg11[%c0_42, %c0_43], %61 {strides = array<i32>} : memref<1x128xf32, #tpu.memory_space<vmem>>, vector<1x128xf32>,
    return
  }
}

</mosaic_0001>

<bundles_post_ra>
// kernel: cnn_forward.1
= control target key start
LH: loop header
LB: loop body
LE: loop exit
PB: predicated region body
PF: predicated region fallthrough
CT: control target
= control target key end

     0   :  { %v1137_v2 = vmov 0.0|0.0   ;;  %vm1138_vm0 = vmmov 0   ;;  %v1139_v4 = vmov 0.0   ;;  %s1356_s0 = inlined_call_operand.vmem [shape: f32[7,16], index: 0, kind: input, shape index: {}]   ;;  %s1357_s1 = inlined_call_operand.vmem [shape: f32[32,8], index: 1, kind: input, shape index: {}]   ;;  %s1358_s2 = inlined_call_operand.vmem [shape: f32[1,8], index: 2, kind: input, shape index: {}]   ;;  %s1359_s3 = inlined_call_operand.vmem [shape: f32[16,12], index: 3, kind: input, shape index: {}]   ;;  %s1360_s4 = inlined_call_operand.vmem [shape: f32[1,12], index: 4, kind: input, shape index: {}]   ;;  %s1361_s5 = inlined_call_operand.vmem [shape: f32[24,16], index: 5, kind: input, shape index: {}]   ;;  %s1362_s6 = inlined_call_operand.vmem [shape: f32[1,16], index: 6, kind: input, shape index: {}]   ;;  %s1363_s7 = inlined_call_operand.vmem [shape: f32[32,20], index: 7, kind: input, shape index: {}]   ;;  %s1364_s8 = inlined_call_operand.vmem [shape: f32[1,20], index: 8, kind: input, shape index: {}]   ;;  %s1365_s9 = inlined_call_operand.vmem [shape: f32[60,128], index: 9, kind: input, shape index: {}]   ;;  %s1366_s10 = inlined_call_operand.vmem [shape: f32[1,128], index: 10, kind: input, shape index: {}]   ;;  %s1367_s11 = inlined_call_operand.hbm [shape: f32[1,128], index: 11, kind: output, shape index: {}]  }
   0x1   :  { %v42_v0 = vld [vmem:[%s1357_s1 + $0x10] sm:$0xff]  ;;  %v43_v1 = vld [vmem:[%s1357_s1 + $0x18] sm:$0xff]  ;;  %1074 = vmatprep.subr.bf16.mxu1 %v1137_v2  ;;  %999 = vmatprep.mubr.msk.f32.mxu1 %vm1138_vm0, %v1139_v4  ;;  %v39_v5 = vld [vmem:[%s1356_s0] sm:$0x7f] }
   0x2   :  { %v1075_v3 = vpack.c.bf16 %v43_v1, %v42_v0  ;;  %v40_v6 = vld [vmem:[%s1357_s1] sm:$0xff]  ;;  %v41_v7 = vld [vmem:[%s1357_s1 + $0x8] sm:$0xff]  ;;  %v45_v8 = vrot.slane %v39_v5, 1  ;;  %1009 = vmatprep.subr.mxu0 %v1139_v4  ;;  %1011 = vmatprep.mubr.msk.f32.mxu0 %vm1138_vm0, %v1139_v4 }
   0x3   :  { %16 = vsyncpa [#allocation3], 0  ;;  %vm46_vm1 = vcmask 130048   ;;  %v1078_v9 = vpack.c.bf16 %v41_v7, %v40_v6  ;;  %v200_v10 = vld [vmem:[%s1359_s3] sm:$0xff]  ;;  %v201_v11 = vld [vmem:[%s1359_s3 + $0x8] sm:$0xff]  ;;  %vm204_vm2 = vcmask 64512  }
   0x4   :  { %1076 = vmatpush3.bf16.msra.mxu1 %v1075_v3  ;;  %1010 = vmatpush3.msra.mxu0 %v201_v11  ;;  %v943_v15 = vld [vmem:[%s1358_s2] ss:$0 sm:$0xff]  ;;  %v360_v21 = vld [vmem:[%s1361_s5 + $0xc] sm:$0xff]  ;;  %v361_v22 = vld [vmem:[%s1361_s5 + $0x14] sm:$0xf]  ;;  %vm367_vm3 = vcmask 1043456  }
   0x5   :  { %1077 = vmatprep.subr.bf16.mxu1 %v1137_v2  ;;  %1088 = vmatprep.subr.bf16.mxu0 %v1137_v2  ;;  %v1081_v23 = vpack.c.bf16 %v361_v22, %v360_v21  ;;  %vm1140_vm4 = vmmov 1   ;;  %v946_v28 = vld [vmem:[%s1360_s4] ss:$0 sm:$0xff]  ;;  %v359_v33 = vld [vmem:[%s1361_s5 + $0x8] sm:$0xf]  ;;  %vm364_vm6 = vcmask 97280  }
   0x6   :  { %vm1253_vm5 = vmpackc.low %vm367_vm3, %vm1140_vm4  ;;  %v358_v32 = vld [vmem:[%s1361_s5] sm:$0xff]  ;;  %v526_v38 = vld [vmem:[%s1363_s7 + $0x8] sm:$0xff]  ;;  %vm688_vm7 = vcmask 162816   ;;  %s1141_s22 = smov [#allocation2]  }
   0x7   :  { %1000 = vmatmul.mubr.msk.f32.vlgmr.msra.gmra.mrb[0].mxu1 %vm46_vm1, %v45_v8  ;;  %v1085_v35 = vpack.c.bf16 %v359_v33, %v358_v32  ;;  %v525_v37 = vld [vmem:[%s1363_s7] sm:$0xff]  ;;  %v527_v40 = vld [vmem:[%s1363_s7 + $0x10] sm:$0xff]  ;;  %v528_v41 = vld [vmem:[%s1363_s7 + $0x18] sm:$0xff]  ;;  %s933_s23 = sshll.u32 %s1141_s22, 4  ;;  %s934_s23 = int_to_ptr.vmem [resolvable:$true] %s933_s23 }
   0x8   :  { %1079 = vmatpush3.bf16.msra.mxu1 %v1078_v9  ;;  %1006 = vmatprep.mubr.msk.f32.mxu1 %vm1138_vm0, %v1139_v4  ;;  %v1092_v39 = vpack.c.bf16 %v526_v38, %v525_v37  ;;  %v1089_v42 = vpack.c.bf16 %v528_v41, %v527_v40  ;;  %v951_v46 = vld [vmem:[%s1362_s6] ss:$0 sm:$0xff]  ;;  %v686_v53 = vld [vmem:[%s1365_s9 + $0x8] sm:$0xff]  ;;  %v687_v55 = vld [vmem:[%s1365_s9 + $0x10] sm:$0xf]  ;;  %s1113_s24 = scalar_lea.vmem %s934_s23, 16  ;;  %p1118_p1 = scmp.lt.s32.totalorder %s934_s23, %s934_s23 }
   0x9   :  { %1014 = vmatprep.subr.mxu1 %v1139_v4  ;;  %v685_v52 = vld [vmem:[%s1365_s9] sm:$0xff]  ;;  %v766_v62 = vld [vmem:[%s1365_s9 + $0x14] sm:$0xff]  ;;  %v846_v6 = vld [vmem:[%s1365_s9 + $0x28] sm:$0xff]  ;;  %p1114_p0 = scmp.ne.s32.totalorder %s934_s23, %s1113_s24  ;;  %s1117_s25 = scalar_lea.vmem %s934_s23, 32 }
   0xa   :  { %v1095_v54 = vpack.c.bf16 %v686_v53, %v685_v52  ;;  %v954_v59 = vld [vmem:[%s1364_s8] ss:$0 sm:$0xff]  ;;  %v847_v7 = vld [vmem:[%s1365_s9 + $0x30] sm:$0xff]  ;;  %p1119_p2 = scmp.lt.s32.totalorder %s1117_s25, %s1113_s24 }
   0xb   :  { %1007 = vmatmul.mubr.msk.f32.vlgmr.msra.gmra.mrb[2].mxu1 %vm46_vm1, %v39_v5  ;;  %v767_v63 = vld [vmem:[%s1365_s9 + $0x1c] sm:$0xff]  ;;  %v768_v5 = vld [vmem:[%s1365_s9 + $0x24] sm:$0xf]  ;;  %v1101_v8 = vpack.c.bf16 %v847_v7, %v846_v6 }
   0xc   :  { %1016 = vmatprep.mubr.msk.f32.mxu1 %vm1138_vm0, %v1139_v4  ;;  %1015 = vmatpush3.msra.mxu1 %v200_v10  ;;  %v1098_v1 = vpack.c.bf16 %v767_v63, %v766_v62  ;;  %v848_v10 = vld [vmem:[%s1365_s9 + $0x38] sm:$0xf]  ;;  %p1120_p3 = por %p1119_p2, %p1118_p1 }
   0xd   :  { %1080 = vmatprep.subr.bf16.mxu1 %v1137_v2 }
   0xe   :  { %p1121_p4 = pnand %p1120_p3, %p1114_p0 }
  0xda   :  { %v115_v12 = vpop.f32.mrb[0].mxu1 }
  0xdb   :  { %v1001_v13 = vpop.f32.mrb[1].mxu1 }
  0xde   :  { %v187_v14 = vpop.f32.mrb[2].mxu1 }
  0xdf   :  { %v188_v16 = vadd.f32 %v187_v14, %v115_v12  ;;  %v1008_v17 = vpop.f32.mrb[3].mxu1 }
  0xe1   :  { %v198_v18 = vadd.f32 %v943_v15, %v188_v16 }
  0xe3   :  { %v199_v19 = vmax.f32 %v198_v18, 0.0 }
  0xe5   :  { %v203_v20 = vrot.slane %v199_v19, 1  ;;  %1017 = vmatmul.mubr.msk.f32.vlgmr.msra.gmra.mrb[4].mxu1 %vm204_vm2, %v199_v19 }
  0xe6   :  { %1023 = vmatprep.mubr.msk.f32.mxu1 %vm1138_vm0, %v1139_v4  ;;  %1083 = vmatpush3.bf16.msk.msra.mxu1 %vm1253_vm5, %v1081_v23 }
  0xe7   :  { %1012 = vmatmul.mubr.msk.f32.vlgmr.msra.gmra.mrb[0].mxu0 %vm204_vm2, %v203_v20  ;;  %1084 = vmatprep.subr.bf16.mxu1 %v1137_v2 }
  0xe8   :  { %1037 = vmatprep.mubr.msk.f32.mxu0 %vm1138_vm0, %v1139_v4  ;;  %1090 = vmatpush3.bf16.msra.mxu0 %v1089_v42 }
  0xe9   :  { %1094 = vmatprep.subr.bf16.mxu0 %v1137_v2 }
 0x1b8   :  { %v345_v25 = vpop.f32.mrb[4].mxu1 }
 0x1b9   :  { %v1018_v26 = vpop.f32.mrb[5].mxu1 }
 0x1ba   :  { %v273_v27 = vpop.f32.mrb[0].mxu0 }
 0x1bb   :  { %v346_v29 = vadd.f32 %v345_v25, %v273_v27  ;;  %v1013_v30 = vpop.f32.mrb[1].mxu0 }
 0x1bd   :  { %v356_v31 = vadd.f32 %v946_v28, %v346_v29 }
 0x1bf   :  { %v357_v34 = vmax.f32 %v356_v31, 0.0 }
 0x1c1   :  { %v363_v36 = vrot.slane %v357_v34, 1 }
 0x1c3   :  { %1024 = vmatmul.mubr.msk.f32.vlgmr.msra.gmra.mrb[6].mxu1 %vm364_vm6, %v363_v36 }
 0x1c4   :  { %1087 = vmatpush3.bf16.msk.msra.mxu1 %vm1253_vm5, %v1085_v35  ;;  %1030 = vmatprep.mubr.msk.f32.mxu1 %vm1138_vm0, %v1139_v4 }
 0x1c5   :  { %1091 = vmatprep.subr.bf16.mxu1 %v1137_v2 }
 0x1c7   :  { %1031 = vmatmul.mubr.msk.f32.vlgmr.msra.gmra.mrb[8].mxu1 %vm364_vm6, %v357_v34 }
 0x1c8   :  { %1044 = vmatprep.mubr.msk.f32.mxu1 %vm1138_vm0, %v1139_v4  ;;  %1093 = vmatpush3.bf16.msra.mxu1 %v1092_v39 }
 0x296   :  { %v437_v43 = vpop.f32.mrb[6].mxu1 }
 0x297   :  { %v1025_v44 = vpop.f32.mrb[7].mxu1 }
 0x29a   :  { %v512_v45 = vpop.f32.mrb[8].mxu1 }
 0x29b   :  { %v513_v47 = vadd.f32 %v512_v45, %v437_v43  ;;  %v1032_v48 = vpop.f32.mrb[9].mxu1 }
 0x29d   :  { %v523_v49 = vadd.f32 %v951_v46, %v513_v47 }
 0x29f   :  { %v524_v50 = vmax.f32 %v523_v49, 0.0 }
 0x2a1   :  { %v530_v51 = vrot.slane %v524_v50, 1  ;;  %1045 = vmatmul.mubr.msk.f32.vlgmr.msra.gmra.mrb[10].mxu1 %vm46_vm1, %v524_v50 }
 0x2a3   :  { %1038 = vmatmul.mubr.msk.f32.vlgmr.msra.gmra.mrb[2].mxu0 %vm46_vm1, %v530_v51 }
 0x2a4   :  { %1053 = vmatprep.mubr.msk.f32.mxu0 %vm1138_vm0, %v1139_v4  ;;  %1096 = vmatpush3.bf16.msra.mxu0 %v1095_v54 }
 0x2a5   :  { %1051 = vmatprep.subr.mxu0 %v1139_v4 }
 0x2a8   :  { %1052 = vmatpush3.msk.msra.mxu0 %vm367_vm3, %v687_v55 }
 0x2a9   :  { %1097 = vmatprep.subr.bf16.mxu0 %v1137_v2 }
 0x374   :  { %v671_v56 = vpop.f32.mrb[10].mxu1 }
 0x375   :  { %v1046_v57 = vpop.f32.mrb[11].mxu1 }
 0x376   :  { %v599_v58 = vpop.f32.mrb[2].mxu0 }
 0x377   :  { %v672_v60 = vadd.f32 %v671_v56, %v599_v58  ;;  %v1039_v61 = vpop.f32.mrb[3].mxu0 }
 0x379   :  { %v682_v0 = vadd.f32 %v954_v59, %v672_v60 }
 0x37b   :  { %v683_v3 = vmax.f32 %v682_v0, 0.0 }
 0x37d   :  { %1054 = vmatmul.mubr.msk.f32.vlgmr.msra.gmra.mrb[4].mxu0 %vm688_vm7, %v683_v3  ;;  %v769_v9 = vrot.slane %v683_v3, 1  ;;  %v849_v11 = vrot.slane %v683_v3, 2 }
 0x37e   :  { %1099 = vmatpush3.bf16.msra.mxu0 %v1098_v1  ;;  %1062 = vmatprep.mubr.msk.f32.mxu0 %vm1138_vm0, %v1139_v4 }
 0x37f   :  { %1060 = vmatprep.subr.mxu0 %v1139_v4 }
 0x382   :  { %1061 = vmatpush3.msk.msra.mxu0 %vm367_vm3, %v768_v5 }
 0x383   :  { %1100 = vmatprep.subr.bf16.mxu0 %v1137_v2  ;;  %v684_v2 = vld [vmem:[%s1366_s10] sm:$0x1] }
 0x385   :  { %1063 = vmatmul.mubr.msk.f32.vlgmr.msra.gmra.mrb[4].mxu0 %vm688_vm7, %v769_v9 }
 0x386   :  { %1102 = vmatpush3.bf16.msra.mxu0 %v1101_v8  ;;  %1071 = vmatprep.mubr.msk.f32.mxu0 %vm1138_vm0, %v1139_v4 }
 0x387   :  { %1069 = vmatprep.subr.mxu0 %v1139_v4 }
 0x38a   :  { %1070 = vmatpush3.msk.msra.mxu0 %vm367_vm3, %v848_v10 }
 0x38d   :  { %1072 = vmatmul.mubr.msk.f32.vlgmr.msra.gmra.mrb[4].mxu0 %vm688_vm7, %v849_v11 }
 0x460   :  { %v921_v12 = vpop.f32.mrb[4].mxu0 }
 0x461   :  { %v1103_v13 = vadd.f32 %v921_v12, %v684_v2  ;;  %v1073_v14 = vpop.f32.mrb[5].mxu0 }
 0x463   :  { %926 = vst [vmem:[#allocation2] sm:$0x1] %v1103_v13 }
 0x464   :  { %1124 = shalt.err (!%p1121_p4)
}
 0x465   :  { %s1125_s0 = scalar_lea.hbm %s1367_s11, 16 }
 0x466   :  { %p1126_p5 = scmp.ne.s32.totalorder %s1367_s11, %s1125_s0  ;;  %p1129_p6 = scmp.lt.u32.totalorder %s1125_s0, %s1367_s11 }
 0x468   :  { %p1131_p7 = pnand %p1129_p6, %p1126_p5 }
 0x46a   :  { %1134 = shalt.err (!%p1131_p7)
}
 0x46b   :  { %936 = dma.vmem_to_hbm [thread:$0]  %s934_s23, 16, %s1367_s11, [#allocation3]  }
 0x46c   :  { %1135 = dma.done.wait [#allocation3], 16  }
 0x46d   :  { %1136 = vsyncadd [#allocation3], 4294967280 }
 0x46e   :  { %940 = vsyncpa [#allocation3], 1 }

</bundles_post_ra>
